<compile_context>
chip_gen: v7x
topology: tpu7x:2x2x1
jax: 0.10.0
libtpu: 0.0.40
codegen_flags: <defaults>
</compile_context>

<pallas_src>
import jax
import jax.numpy as jnp
from jax.experimental import pallas as pl
from jax.experimental.pallas import tpu as pltpu

B = 2            # batch
S = 16           # config.sentence_max_size
D = 32           # config.word_embedding_dimension
C = 20           # conv out_channels (fixed at 20 in the module)
LABELS = 5       # config.label_num
KS = (2, 3, 4)
KD_MAX = 4 * D   # 128 rows in the padded im2col conv-weight slab


def textcnn_kernel(x_ref, w_ref, lin_ref, out_ref):
    x = x_ref[...]                       # (B, S, D) f32
    w_slab = w_ref[...]                  # (3, KD_MAX+1, C): rows [:k*D] weight, row [KD_MAX] bias
    lin = lin_ref[...]                   # (3*C+1, LABELS): rows [:3C] weight, row [3C] bias

    acc = lin[3 * C:, :]                 # (1, LABELS) linear bias; broadcasts over batch
    for i, k in enumerate(KS):           # static unroll, k in {2,3,4}
        T = S - k + 1
        kd = k * D
        # im2col: sliding windows along the sentence axis -> (B, T, k*D).
        win = jnp.concatenate([x[:, dk:dk + T, :] for dk in range(k)], axis=-1)
        s = jnp.dot(win.reshape(B * T, kd), w_slab[i, :kd, :],
                    preferred_element_type=jnp.float32)           # single MXU contraction
        s = s.reshape(B, T, C) + w_slab[i, KD_MAX, :].reshape(1, 1, C)
        s = jnp.maximum(s, 0.0)                                   # ReLU
        p = jnp.max(s, axis=1)                                    # max over time -> (B, C)
        acc = acc + jnp.dot(p, lin[i * C:(i + 1) * C, :],
                            preferred_element_type=jnp.float32)
    # nn.Dropout -> identity at inference.
    out_ref[...] = jax.nn.sigmoid(acc)


def textcnn_forward(x, w_slab, lin_slab):
    vmem = pl.BlockSpec(memory_space=pltpu.MemorySpace.VMEM)
    return pl.pallas_call(
        textcnn_kernel,
        out_shape=jax.ShapeDtypeStruct((B, LABELS), jnp.float32),
        in_specs=[vmem, vmem, vmem],
        out_specs=vmem,
    )(x, w_slab, lin_slab)


def init_params(key):
    ks = jax.random.split(key, 8)
    scale = 0.1
    w2 = scale * jax.random.normal(ks[0], (2, D, C), jnp.float32)
    b2 = scale * jax.random.normal(ks[1], (1, C), jnp.float32)
    w3 = scale * jax.random.normal(ks[2], (3, D, C), jnp.float32)
    b3 = scale * jax.random.normal(ks[3], (1, C), jnp.float32)
    w4 = scale * jax.random.normal(ks[4], (4, D, C), jnp.float32)
    b4 = scale * jax.random.normal(ks[5], (1, C), jnp.float32)
    lw = scale * jax.random.normal(ks[6], (3 * C, LABELS), jnp.float32)
    lb = scale * jax.random.normal(ks[7], (1, LABELS), jnp.float32)
    return (w2, b2, w3, b3, w4, b4, lw, lb)


def pack_params(params):
    """Pack 8 small parameter arrays into 2 slabs (fewer, larger HBM->VMEM DMAs)."""
    w2, b2, w3, b3, w4, b4, lw, lb = params
    w_slab = jnp.zeros((3, KD_MAX + 1, C), jnp.float32)
    for i, (w, b, k) in enumerate(((w2, b2, 2), (w3, b3, 3), (w4, b4, 4))):
        w_slab = w_slab.at[i, :k * D, :].set(w.reshape(k * D, C))   # im2col weight (k*D, C)
        w_slab = w_slab.at[i, KD_MAX, :].set(b.reshape(C))          # conv bias row
    lin_slab = jnp.concatenate([lw, lb.reshape(1, LABELS)], axis=0)  # (3*C+1, LABELS)
    return w_slab, lin_slab


def textcnn_reference(x, params):
    """Pure-JAX reference of the same forward (for correctness check)."""
    w2, b2, w3, b3, w4, b4, lw, lb = params
    pooled = []
    for w, b, k in ((w2, b2, 2), (w3, b3, 3), (w4, b4, 4)):
        T = S - k + 1
        s = jnp.zeros((B, T, C), jnp.float32)
        for dk in range(k):
            s = s + jnp.einsum('btd,dc->btc', x[:, dk:dk + T, :], w[dk],
                               precision=jax.lax.Precision.HIGHEST)
        s = jnp.maximum(s + b.reshape(1, 1, C), 0.0)
        pooled.append(jnp.max(s, axis=1))
    feat = jnp.concatenate(pooled, axis=-1)
    logits = jnp.dot(feat, lw, precision=jax.lax.Precision.HIGHEST) + lb
    return jax.nn.sigmoid(logits)


if __name__ == "__main__":
    key = jax.random.PRNGKey(0)
    k_x, k_p = jax.random.split(key)
    x = jax.random.normal(k_x, (B, S, D), jnp.float32)
    params = init_params(k_p)
    w_slab, lin_slab = pack_params(params)

    out = jax.block_until_ready(textcnn_forward(x, w_slab, lin_slab))
    ref = jax.block_until_ready(textcnn_reference(x, params))

    assert out.shape == (B, LABELS)
    assert bool(jnp.all(jnp.isfinite(out)))
    assert bool(jnp.allclose(out, ref, rtol=1e-3, atol=1e-3))
    print("KERNEL_OK")
</pallas_src>

<mosaic_0001>
module attributes {stable_mosaic.version = 11 : i64} {
  func.func @textcnn_kernel(%arg0: memref<2x16x32xf32, #tpu.memory_space<vmem>>, %arg1: memref<3x129x20xf32, #tpu.memory_space<vmem>>, %arg2: memref<61x5xf32, #tpu.memory_space<vmem>>, %arg3: memref<2x5xf32, #tpu.memory_space<vmem>>) attributes {dimension_semantics = [], scalar_prefetch = 0 : i64, scratch_operands = 0 : i64, tpu.core_type = #tpu.core_type<tc>} {
    %c0 = arith.constant 0 : index
    %c0_0 = arith.constant 0 : index
    %c0_1 = arith.constant 0 : index
    %0 = vector.load %arg0[%c0, %c0_0, %c0_1] : memref<2x16x32xf32, #tpu.memory_space<vmem>>, vector<2x16x32xf32>
    %c0_2 = arith.constant 0 : index
    %c0_3 = arith.constant 0 : index
    %c0_4 = arith.constant 0 : index
    %1 = vector.load %arg1[%c0_2, %c0_3, %c0_4] : memref<3x129x20xf32, #tpu.memory_space<vmem>>, vector<3x129x20xf32>
    %c0_5 = arith.constant 0 : index
    %c0_6 = arith.constant 0 : index
    %2 = vector.load %arg2[%c0_5, %c0_6] : memref<61x5xf32, #tpu.memory_space<vmem>>, vector<61x5xf32>
    %3 = vector.extract_strided_slice %2 {offsets = [60, 0], sizes = [1, 5], strides = [1, 1]} : vector<61x5xf32> to vector<1x5xf32>
    %4 = vector.extract_strided_slice %0 {offsets = [0, 0, 0], sizes = [2, 15, 32], strides = [1, 1, 1]} : vector<2x16x32xf32> to vector<2x15x32xf32>
    %5 = vector.extract_strided_slice %0 {offsets = [0, 1, 0], sizes = [2, 15, 32], strides = [1, 1, 1]} : vector<2x16x32xf32> to vector<2x15x32xf32>
    %6 = tpu.concatenate %4, %5 in 2 : vector<2x15x32xf32>, vector<2x15x32xf32> -> vector<2x15x64xf32>
    %7 = vector.shape_cast %6 : vector<2x15x64xf32> to vector<30x64xf32>
    %8 = vector.extract_strided_slice %1 {offsets = [0, 0, 0], sizes = [1, 64, 20], strides = [1, 1, 1]} : vector<3x129x20xf32> to vector<1x64x20xf32>
    %9 = vector.shape_cast %8 : vector<1x64x20xf32> to vector<64x20xf32>
    %cst = arith.constant dense<0.000000e+00> : vector<30x20xf32>
    %10 = tpu.matmul %7, %9, %cst {dimension_numbers = #tpu.dot_dimension_numbers<[1], [0], [0], [1], [0, 0, 1, 1], [], []>} : vector<30x64xf32>, vector<64x20xf32>, vector<30x20xf32> -> vector<30x20xf32>
    %11 = vector.shape_cast %10 : vector<30x20xf32> to vector<2x15x20xf32>
    %12 = vector.extract_strided_slice %1 {offsets = [0, 128, 0], sizes = [1, 1, 20], strides = [1, 1, 1]} : vector<3x129x20xf32> to vector<1x1x20xf32>
    %13 = vector.shape_cast %12 : vector<1x1x20xf32> to vector<20xf32>
    %14 = vector.shape_cast %13 : vector<20xf32> to vector<1x1x20xf32>
    %15 = vector.broadcast %14 : vector<1x1x20xf32> to vector<2x15x20xf32>
    %16 = arith.addf %11, %15 : vector<2x15x20xf32>
    %cst_7 = arith.constant 0.000000e+00 : f32
    %17 = vector.broadcast %cst_7 : f32 to vector<2x15x20xf32>
    %18 = arith.maximumf %16, %17 : vector<2x15x20xf32>
    %cst_8 = arith.constant dense<0xFF800000> : vector<2x20xf32>
    %19 = vector.multi_reduction <maximumf>, %18, %cst_8 [1] : vector<2x15x20xf32> to vector<2x20xf32>
    %20 = vector.extract_strided_slice %2 {offsets = [0, 0], sizes = [20, 5], strides = [1, 1]} : vector<61x5xf32> to vector<20x5xf32>
    %cst_9 = arith.constant dense<0.000000e+00> : vector<2x5xf32>
    %21 = tpu.matmul %19, %20, %cst_9 {dimension_numbers = #tpu.dot_dimension_numbers<[1], [0], [0], [1], [0, 0, 1, 1], [], []>} : vector<2x20xf32>, vector<20x5xf32>, vector<2x5xf32> -> vector<2x5xf32>
    %22 = vector.broadcast %3 : vector<1x5xf32> to vector<2x5xf32>
    %23 = arith.addf %22, %21 : vector<2x5xf32>
    %24 = vector.extract_strided_slice %0 {offsets = [0, 0, 0], sizes = [2, 14, 32], strides = [1, 1, 1]} : vector<2x16x32xf32> to vector<2x14x32xf32>
    %25 = vector.extract_strided_slice %0 {offsets = [0, 1, 0], sizes = [2, 14, 32], strides = [1, 1, 1]} : vector<2x16x32xf32> to vector<2x14x32xf32>
    %26 = vector.extract_strided_slice %0 {offsets = [0, 2, 0], sizes = [2, 14, 32], strides = [1, 1, 1]} : vector<2x16x32xf32> to vector<2x14x32xf32>
    %27 = tpu.concatenate %24, %25, %26 in 2 : vector<2x14x32xf32>, vector<2x14x32xf32>, vector<2x14x32xf32> -> vector<2x14x96xf32>
    %28 = vector.shape_cast %27 : vector<2x14x96xf32> to vector<28x96xf32>
    %29 = vector.extract_strided_slice %1 {offsets = [1, 0, 0], sizes = [1, 96, 20], strides = [1, 1, 1]} : vector<3x129x20xf32> to vector<1x96x20xf32>
    %30 = vector.shape_cast %29 : vector<1x96x20xf32> to vector<96x20xf32>
    %cst_10 = arith.constant dense<0.000000e+00> : vector<28x20xf32>
    %31 = tpu.matmul %28, %30, %cst_10 {dimension_numbers = #tpu.dot_dimension_numbers<[1], [0], [0], [1], [0, 0, 1, 1], [], []>} : vector<28x96xf32>, vector<96x20xf32>, vector<28x20xf32> -> vector<28x20xf32>
    %32 = vector.shape_cast %31 : vector<28x20xf32> to vector<2x14x20xf32>
    %33 = vector.extract_strided_slice %1 {offsets = [1, 128, 0], sizes = [1, 1, 20], strides = [1, 1, 1]} : vector<3x129x20xf32> to vector<1x1x20xf32>
    %34 = vector.shape_cast %33 : vector<1x1x20xf32> to vector<20xf32>
    %35 = vector.shape_cast %34 : vector<20xf32> to vector<1x1x20xf32>
    %36 = vector.broadcast %35 : vector<1x1x20xf32> to vector<2x14x20xf32>
    %37 = arith.addf %32, %36 : vector<2x14x20xf32>
    %cst_11 = arith.constant 0.000000e+00 : f32
    %38 = vector.broadcast %cst_11 : f32 to vector<2x14x20xf32>
    %39 = arith.maximumf %37, %38 : vector<2x14x20xf32>
    %cst_12 = arith.constant dense<0xFF800000> : vector<2x20xf32>
    %40 = vector.multi_reduction <maximumf>, %39, %cst_12 [1] : vector<2x14x20xf32> to vector<2x20xf32>
    %41 = vector.extract_strided_slice %2 {offsets = [20, 0], sizes = [20, 5], strides = [1, 1]} : vector<61x5xf32> to vector<20x5xf32>
    %cst_13 = arith.constant dense<0.000000e+00> : vector<2x5xf32>
    %42 = tpu.matmul %40, %41, %cst_13 {dimension_numbers = #tpu.dot_dimension_numbers<[1], [0], [0], [1], [0, 0, 1, 1], [], []>} : vector<2x20xf32>, vector<20x5xf32>, vector<2x5xf32> -> vector<2x5xf32>
    %43 = arith.addf %23, %42 : vector<2x5xf32>
    %44 = vector.extract_strided_slice %0 {offsets = [0, 0, 0], sizes = [2, 13, 32], strides = [1, 1, 1]} : vector<2x16x32xf32> to vector<2x13x32xf32>
    %45 = vector.extract_strided_slice %0 {offsets = [0, 1, 0], sizes = [2, 13, 32], strides = [1, 1, 1]} : vector<2x16x32xf32> to vector<2x13x32xf32>
    %46 = vector.extract_strided_slice %0 {offsets = [0, 2, 0], sizes = [2, 13, 32], strides = [1, 1, 1]} : vector<2x16x32xf32> to vector<2x13x32xf32>
    %47 = vector.extract_strided_slice %0 {offsets = [0, 3, 0], sizes = [2, 13, 32], strides = [1, 1, 1]} : vector<2x16x32xf32> to vector<2x13x32xf32>
    %48 = tpu.concatenate %44, %45, %46, %47 in 2 : vector<2x13x32xf32>, vector<2x13x32xf32>, vector<2x13x32xf32>, vector<2x13x32xf32> -> vector<2x13x128xf32>
    %49 = vector.shape_cast %48 : vector<2x13x128xf32> to vector<26x128xf32>
    %50 = vector.extract_strided_slice %1 {offsets = [2, 0, 0], sizes = [1, 128, 20], strides = [1, 1, 1]} : vector<3x129x20xf32> to vector<1x128x20xf32>
    %51 = vector.shape_cast %50 : vector<1x128x20xf32> to vector<128x20xf32>
    %cst_14 = arith.constant dense<0.000000e+00> : vector<26x20xf32>
    %52 = tpu.matmul %49, %51, %cst_14 {dimension_numbers = #tpu.dot_dimension_numbers<[1], [0], [0], [1], [0, 0, 1, 1], [], []>} : vector<26x128xf32>, vector<128x20xf32>, vector<26x20xf32> -> vector<26x20xf32>
    %53 = vector.shape_cast %52 : vector<26x20xf32> to vector<2x13x20xf32>
    %54 = vector.extract_strided_slice %1 {offsets = [2, 128, 0], sizes = [1, 1, 20], strides = [1, 1, 1]} : vector<3x129x20xf32> to vector<1x1x20xf32>
    %55 = vector.shape_cast %54 : vector<1x1x20xf32> to vector<20xf32>
    %56 = vector.shape_cast %55 : vector<20xf32> to vector<1x1x20xf32>
    %57 = vector.broadcast %56 : vector<1x1x20xf32> to vector<2x13x20xf32>
    %58 = arith.addf %53, %57 : vector<2x13x20xf32>
    %cst_15 = arith.constant 0.000000e+00 : f32
    %59 = vector.broadcast %cst_15 : f32 to vector<2x13x20xf32>
    %60 = arith.maximumf %58, %59 : vector<2x13x20xf32>
    %cst_16 = arith.constant dense<0xFF800000> : vector<2x20xf32>
    %61 = vector.multi_reduction <maximumf>, %60, %cst_16 [1] : vector<2x13x20xf32> to vector<2x20xf32>
    %62 = vector.extract_strided_slice %2 {offsets = [40, 0], sizes = [20, 5], strides = [1, 1]} : vector<61x5xf32> to vector<20x5xf32>
    %cst_17 = arith.constant dense<0.000000e+00> : vector<2x5xf32>
    %63 = tpu.matmul %61, %62, %cst_17 {dimension_numbers = #tpu.dot_dimension_numbers<[1], [0], [0], [1], [0, 0, 1, 1], [], []>} : vector<2x20xf32>, vector<20x5xf32>, vector<2x5xf32> -> vector<2x5xf32>
    %64 = arith.addf %43, %63 : vector<2x5xf32>
    %65 = arith.negf %64 : vector<2x5xf32>
    %66 = math.exp %65 : vector<2x5xf32>
    %cst_18 = arith.constant 1.000000e+00 : f32
    %67 = vector.broadcast %cst_18 : f32 to vector<2x5xf32>
    %68 = arith.addf %67, %66 : vector<2x5xf32>
    %69 = arith.divf %67, %68 : vector<2x5xf32>
    %c0_19 = arith.constant 0 : index
    %c0_20 = arith.constant 0 : index
    %70 = vector.load %arg3[%c0_19, %c0_20] : memref<2x5xf32, #tpu.memory_space<vmem>>, vector<2x5xf32>
    tpu.vector_store %arg3[%c0_19, %c0_20], %69 {strides = array<i32>} : memref<2x5xf32, #tpu.memory_space<vmem>>, vector<2x5xf32>,
    return
  }
}

</mosaic_0001>

<bundles_post_ra>
// kernel: tpu_custom_call.1
= control target key start
LH: loop header
LB: loop body
LE: loop exit
PB: predicated region body
PF: predicated region fallthrough
CT: control target
= control target key end

     0   :  { %vm70_vm0 = vcmask 1046528   ;;  %s4019_s0 = inlined_call_operand.vmem [shape: f32[2,16,32], index: 0, kind: input, shape index: {}]   ;;  %s4020_s1 = inlined_call_operand.vmem [shape: f32[3,129,20], index: 1, kind: input, shape index: {}]   ;;  %s4021_s2 = inlined_call_operand.vmem [shape: f32[61,5], index: 2, kind: input, shape index: {}]   ;;  %s4022_s3 = inlined_call_operand.hbm [shape: f32[2,5], index: 3, kind: output, shape index: {}]  }
   0x1   :  { %v3272_v0 = vld [vmem:[%s4019_s0 + $0x10] sm:$0xff]  ;;  %v3277_v1 = vld [vmem:[%s4019_s0 + $0x18] sm:$0xff]  ;;  %v3282_v2 = vld [vmem:[%s4019_s0] sm:$0xff] }
   0x2   :  { %v74_v3 = vrot.slane %v3272_v0, 1  ;;  %v75_v4 = vrot.slane %v3277_v1, 1  ;;  %v3289_v5 = vld [vmem:[%s4019_s0 + $0x8] sm:$0xff]  ;;  %v71_v6 = vrot.slane %v3282_v2, 1  ;;  %v19_v9 = vld [vmem:[%s4020_s1] sm:$0xff] }
   0x3   :  { %v72_v7 = vrot.slane %v3289_v5, 1  ;;  %v20_v10 = vld [vmem:[%s4020_s1 + $0x8] sm:$0xff] }
   0x4   :  { %v76_v8 = vsel %vm70_vm0, %v74_v3, %v75_v4 }
   0x5   :  { %8 = vsyncpa [#allocation3], 0  ;;  %s3240_s24 = smov 32   ;;  %v73_v11 = vsel %vm70_vm0, %v71_v6, %v72_v7  ;;  %v1824_v12 = vrot.slane %v3282_v2, 3  ;;  %v1825_v13 = vrot.slane %v3289_v5, 3  ;;  %vm1823_vm1 = vcmask 1044480  }
   0x6   :  { %81 = vrot.lane.b32.xlu1 %v76_v8, %s3240_s24  ;;  %77 = vrot.lane.b32.xlu0 %v73_v11, %s3240_s24  ;;  %v1257_v14 = vrot.slane %v3282_v2, 2  ;;  %v1258_v15 = vrot.slane %v3289_v5, 2  ;;  %v3117_v16 = vpack.c.bf16 %v20_v10, %v19_v9  ;;  %vm1256_vm2 = vcmask 1045504   ;;  %v21_v18 = vld [vmem:[%s4020_s1 + $0x10] sm:$0xff]  ;;  %v22_v19 = vld [vmem:[%s4020_s1 + $0x18] sm:$0xff]  ;;  %s3241_s28 = smov 96  }
   0x7   :  { %v1826_v17 = vsel %vm1823_vm1, %v1824_v12, %v1825_v13  ;;  %v1260_v21 = vrot.slane %v3272_v0, 2  ;;  %v1261_v22 = vrot.slane %v3277_v1, 2  ;;  %v3121_v23 = vpack.c.bf16 %v22_v19, %v21_v18  ;;  %s3242_s29 = smov 64   ;;  %v23_v27 = vld [vmem:[%s4020_s1 + $0x20] sm:$0xff]  ;;  %v24_v28 = vld [vmem:[%s4020_s1 + $0x28] sm:$0xff]  ;;  %v25_v31 = vld [vmem:[%s4020_s1 + $0x30] sm:$0xff] }
   0x8   :  { %3118 = vmatprep.subr.bf16.mxu0 %v3117_v16  ;;  %v1259_v20 = vsel %vm1256_vm2, %v1257_v14, %v1258_v15  ;;  %v1827_v25 = vrot.slane %v3272_v0, 3  ;;  %v1828_v26 = vrot.slane %v3277_v1, 3  ;;  %v3125_v29 = vpack.c.bf16 %v24_v28, %v23_v27  ;;  %v26_v32 = vld [vmem:[%s4020_s1 + $0x38] sm:$0xff]  ;;  %v41_v34 = vld [vmem:[%s4020_s1 + $0x110] sm:$0xff]  ;;  %s3248_s4 = smov [#allocation2]  }
   0x9   :  { %3120 = vmatpush3.bf16.msra.mxu0 %v3117_v16  ;;  %v1262_v24 = vsel %vm1256_vm2, %v1260_v21, %v1261_v22  ;;  %v3129_v33 = vpack.c.bf16 %v26_v32, %v25_v31  ;;  %v42_v35 = vld [vmem:[%s4020_s1 + $0x118] sm:$0xff]  ;;  %v3243_v37 = vmov 1966171168   ;;  %v102_v39 = vlaneseq  ;;  %s2908_s5 = sshll.u32 %s3248_s4, 4  ;;  %s2909_s5 = int_to_ptr.vmem [resolvable:$true] %s2908_s5 }
   0xa   :  { %83 = vrot.lane.b32.xlu1 %v75_v4, %s3240_s24  ;;  %79 = vrot.lane.b32.xlu0 %v72_v7, %s3240_s24  ;;  %v1829_v30 = vsel %vm1823_vm1, %v1827_v25, %v1828_v26  ;;  %v3335_v36 = vpack.c.bf16 %v42_v35, %v41_v34  ;;  %v100_v38 = vunpack.c.l.s4 %v3243_v37  ;;  %vm89_vm3 = vcmask 261120   ;;  %p3221_p1 = scmp.lt.s32.totalorder %s2909_s5, %s2909_s5 }
   0xb   :  { %3122 = vmatprep.subr.bf16.mxu0 %v3121_v23  ;;  %v3338_v43 = vshrl.u32 %v102_v39, 7  ;;  %v3244_v51 = vmov 1983009808   ;;  %vm479_vm4 = vcmask 523264   ;;  %vm1408_vm5 = vcmask 785408  }
   0xc   :  { %v101_v42 = vunpack.c.0.s8 %v100_v38  ;;  %v1285_v52 = vunpack.c.l.s4 %v3244_v51  ;;  %vm1177_vm6 = vcmask 1043456   ;;  %vm3247_vm7 = vmmov 0  }
   0xd   :  { %3124 = vmatpush3.bf16.msra.mxu0 %v3121_v23  ;;  %vm1151_vm8 = vcmask 162816   ;;  %vm1153_vm9 = vcmask 161792   ;;  %vm2797_vm10 = vcmask 159744   ;;  %vm1173_vm11 = vcmask 1041409  }
   0xe   :  { %1830 = vrot.lane.b32.xlu1 %v1826_v17, %s3241_s28  ;;  %1263 = vrot.lane.b32.xlu0 %v1259_v20, %s3242_s29  ;;  %v3343_v47 = vsub.s32 %v101_v42, %v3338_v43  ;;  %v1286_v59 = vunpack.c.0.s8 %v1285_v52  ;;  %vm1718_vm12 = vcmask 160768   ;;  %vm2900_vm13 = vcmask 33792  }
   0xf   :  { %3126 = vmatprep.subr.bf16.mxu0 %v3125_v29 }
  0x10   :  { %v3363_v7 = vsub.s32 %v1286_v59, %v3338_v43 }
  0x11   :  { %3128 = vmatpush3.bf16.msra.mxu0 %v3125_v29 }
  0x12   :  { %1265 = vrot.lane.b32.xlu1 %v1258_v15, %s3242_s29  ;;  %1267 = vrot.lane.b32.xlu0 %v1262_v24, %s3242_s29 }
  0x13   :  { %3130 = vmatprep.subr.bf16.mxu0 %v3129_v33 }
  0x15   :  { %3132 = vmatpush3.bf16.msra.mxu0 %v3129_v33 }
  0x16   :  { %1832 = vrot.lane.b32.xlu1 %v1825_v13, %s3241_s28  ;;  %1834 = vrot.lane.b32.xlu0 %v1829_v30, %s3241_s28 }
  0x17   :  { %3164 = vmatprep.subr.bf16.mxu0 %v3335_v36 }
  0x1a   :  { %1836 = vrot.lane.b32.xlu1 %v1828_v26, %s3241_s28  ;;  %1269 = vrot.lane.b32.xlu0 %v1261_v22, %s3242_s29 }
  0x78   :  { %v82_v40 = vpop.permute.xlu1 %81  ;;  %v78_v41 = vpop.permute.xlu0 %77 }
  0x79   :  { %v92_v45 = vsel %vm89_vm3, %v3272_v0, %v82_v40  ;;  %v90_v48 = vsel %vm89_vm3, %v3282_v2, %v78_v41 }
  0x7a   :  { %v195_v49 = vcombine.high %v92_v45, %v92_v45  ;;  %v202_v50 = vrot.slane %v92_v45, %v3343_v47  ;;  %v98_v53 = vcombine.high %v90_v48, %v90_v48  ;;  %v105_v55 = vrot.slane %v90_v48, %v3343_v47 }
  0x7c   :  { %v84_v44 = vpop.permute.xlu1 %83  ;;  %v80_v46 = vpop.permute.xlu0 %79  ;;  %v209_v57 = vrot.slane %v195_v49, %v3343_v47  ;;  %v210_v58 = vcombine.high %v202_v50, %v202_v50  ;;  %v3351_v60 = vrot.slane %v202_v50, %v3343_v47  ;;  %v112_v61 = vrot.slane %v98_v53, %v3343_v47 }
  0x7d   :  { %v113_v62 = vcombine.high %v105_v55, %v105_v55  ;;  %v91_v63 = vsel %vm89_vm3, %v3289_v5, %v80_v46  ;;  %v3360_v6 = vsel %vm89_vm3, %v3277_v1, %v84_v44  ;;  %v121_v10 = vrot.slane %v105_v55, %v3343_v47 }
  0x7e   :  { %v211_v0 = vcombine.high %v209_v57, %v209_v57  ;;  %v232_v2 = vrot.slane %v210_v58, %v3343_v47  ;;  %v225_v4 = vrot.slane %v209_v57, %v3343_v47  ;;  %v240_v9 = vcombine.high %v3351_v60, %v3351_v60 }
  0x7f   :  { %v114_v5 = vcombine.high %v112_v61, %v112_v61  ;;  %v147_v11 = vcombine.high %v91_v63, %v91_v63  ;;  %v128_v12 = vrot.slane %v112_v61, %v3343_v47  ;;  %v135_v13 = vrot.slane %v113_v62, %v3343_v47 }
  0x80   :  { %v1831_v54 = vpop.permute.xlu1 %1830  ;;  %v1264_v56 = vpop.permute.xlu0 %1263  ;;  %v244_v1 = vcombine.high %v3360_v6, %v3360_v6  ;;  %v239_v15 = vrot.slane %v211_v0, %v3343_v47  ;;  %v242_v16 = vcombine.high %v232_v2, %v232_v2  ;;  %v251_v17 = vrot.slane %v3360_v6, %v3343_v47 }
  0x81   :  { %v241_v19 = vcombine.high %v225_v4, %v225_v4  ;;  %v154_v20 = vrot.slane %v91_v63, %v3343_v47  ;;  %v3386_v23 = vcombine.low %v232_v2, %v240_v9  ;;  %v142_v24 = vrot.slane %v114_v5, %v3343_v47 }
  0x82   :  { %v161_v25 = vrot.slane %v147_v11, %v3343_v47  ;;  %v3391_v26 = vsel %vm479_vm4, %v90_v48, %v1264_v56  ;;  %v258_v27 = vrot.slane %v244_v1, %v3343_v47  ;;  %v3399_v31 = vcombine.low %v242_v16, %v225_v4 }
  0x83   :  { %v292_v32 = vcombine.low %v121_v10, %v135_v13  ;;  %v2916_v33 = vcombine.high %v121_v10, %v135_v13  ;;  %v259_v34 = vcombine.high %v251_v17, %v251_v17  ;;  %v162_v35 = vcombine.high %v154_v20, %v154_v20 }
  0x84   :  { %v1266_v3 = vpop.permute.xlu1 %1265  ;;  %v1268_v8 = vpop.permute.xlu0 %1267  ;;  %v1842_v37 = vsel %vm1408_vm5, %v3391_v26, %v1831_v54  ;;  %v3404_v40 = vcombine.low %v239_v15, %v241_v19  ;;  %v243_v41 = vcombine.high %v239_v15, %v239_v15  ;;  %v267_v42 = vrot.slane %v251_v17, %v3343_v47 }
  0x85   :  { %v3373_v14 = vsel %vm479_vm4, %v91_v63, %v1266_v3  ;;  %v3379_v18 = vsel %vm479_vm4, %v92_v45, %v1268_v8  ;;  %v163_v44 = vcombine.high %v161_v25, %v161_v25  ;;  %v260_v45 = vcombine.high %v258_v27, %v258_v27 }
  0x86   :  { %v1300_v21 = vcombine.high %v3373_v14, %v3373_v14  ;;  %v1307_v22 = vrot.slane %v3373_v14, %v3363_v7  ;;  %v3397_v30 = vrot.slane %v3379_v18, %v3363_v7  ;;  %v294_v50 = vcombine.low %v128_v12, %v142_v24 }
  0x87   :  { %v274_v51 = vrot.slane %v258_v27, %v3343_v47  ;;  %v281_v52 = vrot.slane %v259_v34, %v3343_v47  ;;  %v177_v53 = vrot.slane %v161_v25, %v3343_v47  ;;  %v1850_v54 = vcombine.high %v1842_v37, %v1842_v37 }
  0x88   :  { %v1314_v28 = vrot.slane %v1300_v21, %v3363_v7  ;;  %v1315_v29 = vcombine.high %v1307_v22, %v1307_v22  ;;  %v1835_v49 = vpop.permute.xlu0 %1834  ;;  %v184_v55 = vrot.slane %v162_v35, %v3343_v47  ;;  %v2917_v57 = vcombine.high %v128_v12, %v142_v24 }
  0x89   :  { %v302_v58 = vrot.slane %v292_v32, %v3343_v47  ;;  %v289_v59 = vcombine.high %v267_v42, %v267_v42  ;;  %v170_v61 = vrot.slane %v154_v20, %v3343_v47  ;;  %v191_v62 = vrot.slane %v163_v44, %v3343_v47  ;;  %v43_v44 = vld [vmem:[%s4020_s1 + $0x120] sm:$0xff] }
  0x8a   :  { %v1366_v38 = vcombine.low %v1307_v22, %v1315_v29  ;;  %v1367_v39 = vcombine.low %v1314_v28, %v3397_v30  ;;  %v1316_v63 = vcombine.high %v3379_v18, %v3379_v18  ;;  %v1857_v0 = vrot.slane %v1842_v37, %v3343_v47 }
  0x8b   :  { %v309_v2 = vrot.slane %v2916_v33, %v3343_v47  ;;  %v316_v3 = vrot.slane %v294_v50, %v3343_v47  ;;  %v323_v4 = vrot.slane %v2917_v57, %v3343_v47  ;;  %v400_v8 = vrot.slane %v3386_v23, %v3343_v47  ;;  %v1833_v50 = vpop.permute.xlu1 %1832 }
  0x8c   :  { %v1374_v46 = vrot.slane %v1366_v38, %v3363_v7  ;;  %v1381_v48 = vrot.slane %v1367_v39, %v3363_v7  ;;  %v291_v9 = vcombine.high %v281_v52, %v281_v52  ;;  %v193_v5 = vcombine.high %v177_v53, %v177_v53  ;;  %v1270_v15 = vpop.permute.xlu0 %1269 }
  0x8d   :  { %v1864_v10 = vrot.slane %v1850_v54, %v3343_v47  ;;  %v407_v11 = vrot.slane %v3399_v31, %v3343_v47  ;;  %v341_v12 = vcombine.low %v170_v61, %v184_v55  ;;  %v2918_v13 = vcombine.high %v170_v61, %v184_v55 }
  0x8e   :  { %v3413_v56 = vcombine.low %v1374_v46, %v1381_v48  ;;  %v324_v1 = vcombine.low %v302_v58, %v309_v2  ;;  %v288_v16 = vrot.slane %v260_v45, %v3343_v47  ;;  %v290_v17 = vcombine.high %v274_v51, %v274_v51  ;;  %v44_v45 = vld [vmem:[%s4020_s1 + $0x128] sm:$0xff] }
  0x8f   :  { %v393_v19 = vcombine.low %v243_v41, %v267_v42  ;;  %v1330_v20 = vrot.slane %v1316_v63, %v3363_v7  ;;  %v439_v21 = vcombine.low %v281_v52, %v289_v59  ;;  %v343_v22 = vcombine.low %v177_v53, %v191_v62 }
  0x90   :  { %v1865_v23 = vcombine.high %v1857_v0, %v1857_v0  ;;  %v325_v24 = vcombine.low %v316_v3, %v323_v4  ;;  %v440_v25 = vcombine.low %v291_v9, %v274_v51  ;;  %v344_v27 = vcombine.low %v193_v5, %v3351_v60 }
  0x91   :  { %v1866_v28 = vcombine.high %v1864_v10, %v1864_v10  ;;  %v3434_v29 = vsel %vm479_vm4, %v3360_v6, %v1270_v15  ;;  %v351_v31 = vrot.slane %v341_v12, %v3343_v47  ;;  %v358_v32 = vrot.slane %v2918_v13, %v3343_v47  ;;  %v1837_v15 = vpop.permute.xlu1 %1836 }
  0x92   :  { %v332_v33 = vrot.slane %v324_v1, %v3343_v47  ;;  %v339_v34 = vrot.slane %v325_v24, %v3343_v47  ;;  %v421_v35 = vrot.slane %v393_v19, %v3343_v47  ;;  %v441_v37 = vcombine.low %v288_v16, %v290_v17  ;;  %v46_v16 = vld [vmem:[%s4020_s1 + $0x138] sm:$0xff] }
  0x93   :  { %v1332_v38 = vcombine.high %v1330_v20, %v1330_v20  ;;  %v3443_v60 = vrot.slane %v3434_v29, %v3363_v7  ;;  %v365_v39 = vrot.slane %v343_v22, %v3343_v47  ;;  %v1887_v6 = vrot.slane %v1865_v23, %v3343_v47 }
  0x94   :  { %v1844_v41 = vsel %vm1408_vm5, %v3379_v18, %v1835_v49  ;;  %v340_v42 = vcombine.low %v332_v33, %v339_v34  ;;  %v448_v46 = vrot.slane %v439_v21, %v3343_v47  ;;  %v1894_v48 = vrot.slane %v1866_v28, %v3343_v47 }
  0x95   :  { %v1384_v51 = vcombine.low %v1332_v38, %v3443_v60  ;;  %v372_v52 = vrot.slane %v344_v27, %v3343_v47  ;;  %v455_v18 = vrot.slane %v440_v25, %v3343_v47  ;;  %v1873_v49 = vrot.slane %v1857_v0, %v3343_v47 }
  0x96   :  { %3016 = vmatprep.mubr.msk.f32.mxu0 %vm479_vm4, %v340_v42  ;;  %v373_v53 = vcombine.low %v351_v31, %v358_v32  ;;  %v414_v54 = vrot.slane %v3404_v40, %v3343_v47  ;;  %v1880_v55 = vrot.slane %v1864_v10, %v3343_v47  ;;  %v1331_v57 = vcombine.high %v3397_v30, %v3397_v30 }
  0x97   :  { %v1938_v58 = vcombine.high %v1844_v41, %v1844_v41  ;;  %v3167_v59 = vpack.c.bf16 %v44_v45, %v43_v44  ;;  %v2026_v61 = vcombine.low %v1873_v49, %v1887_v6  ;;  %v2933_v62 = vcombine.high %v1873_v49, %v1887_v6  ;;  %v48_v44 = vld [vmem:[%s4020_s1 + $0x148] sm:$0xff] }
  0x98   :  { %v374_v63 = vcombine.low %v365_v39, %v372_v52  ;;  %v422_v2 = vcombine.low %v400_v8, %v407_v11  ;;  %v2028_v3 = vcombine.low %v1880_v55, %v1894_v48  ;;  %v2934_v4 = vcombine.high %v1880_v55, %v1894_v48  ;;  %v45_v11 = vld [vmem:[%s4020_s1 + $0x130] sm:$0xff] }
  0x99   :  { %v381_v0 = vrot.slane %v373_v53, %v3343_v47  ;;  %v423_v9 = vcombine.low %v414_v54, %v421_v35  ;;  %v462_v10 = vrot.slane %v441_v37, %v3343_v47  ;;  %v463_v12 = vcombine.low %v448_v46, %v455_v18  ;;  %v49_v55 = vld [vmem:[%s4020_s1 + $0x150] sm:$0xff] }
  0x9a   :  { %v388_v5 = vrot.slane %v374_v63, %v3343_v47  ;;  %v430_v40 = vrot.slane %v422_v2, %v3343_v47  ;;  %v1383_v13 = vcombine.low %v1331_v57, %v1330_v20  ;;  %v1843_v30 = vsel %vm1408_vm5, %v3373_v14, %v1833_v50  ;;  %v50_v57 = vld [vmem:[%s4020_s1 + $0x158] sm:$0xff] }
  0x9b   :  { %v1952_v1 = vrot.slane %v1938_v58, %v3343_v47  ;;  %v437_v8 = vrot.slane %v423_v9, %v3343_v47  ;;  %v470_v19 = vrot.slane %v463_v12, %v3343_v47  ;;  %v477_v20 = vrot.slane %v462_v10, %v3343_v47 }
  0x9c   :  { %v389_v17 = vcombine.low %v381_v0, %v388_v5  ;;  %v2036_v14 = vrot.slane %v2026_v61, %v3343_v47  ;;  %v2043_v22 = vrot.slane %v2933_v62, %v3343_v47  ;;  %v2050_v23 = vrot.slane %v2028_v3, %v3343_v47  ;;  %v51_v3 = vld [vmem:[%s4020_s1 + $0x160] sm:$0xff] }
  0x9d   :  { %v438_v21 = vcombine.low %v430_v40, %v437_v8  ;;  %v2057_v24 = vrot.slane %v2934_v4, %v3343_v47  ;;  %v1398_v25 = vrot.slane %v1384_v51, %v3363_v7  ;;  %v3490_v27 = vsel %vm1408_vm5, %v3434_v29, %v1837_v15  ;;  %v52_v4 = vld [vmem:[%s4020_s1 + $0x168] sm:$0xff] }
  0x9e   :  { %3017 = vmatmul.mubr.msk.f32.vlgmr.msra.gmra.mrb[0].mxu0 %vm479_vm4, %v389_v17  ;;  %v3171_v28 = vpack.c.bf16 %v46_v16, %v45_v11  ;;  %v1945_v31 = vrot.slane %v1844_v41, %v3343_v47  ;;  %v2058_v32 = vcombine.low %v2036_v14, %v2043_v22  ;;  %v1899_v34 = vcombine.high %v1843_v30, %v1843_v30  ;;  %v53_v11 = vld [vmem:[%s4020_s1 + $0x170] sm:$0xff]  ;;  %v54_v16 = vld [vmem:[%s4020_s1 + $0x178] sm:$0xff] }
  0x9f   :  { %3166 = vmatpush3.bf16.msra.mxu0 %v3335_v36  ;;  %3019 = vmatprep.mubr.msk.f32.mxu0 %vm479_vm4, %v438_v21  ;;  %v2059_v33 = vcombine.low %v2050_v23, %v2057_v24  ;;  %v1906_v35 = vrot.slane %v1843_v30, %v3343_v47  ;;  %v478_v37 = vcombine.low %v470_v19, %v477_v20  ;;  %v47_v36 = vld [vmem:[%s4020_s1 + $0x140] sm:$0xff] }
  0xa0   :  { %3168 = vmatprep.subr.bf16.mxu0 %v3167_v59  ;;  %v1391_v38 = vrot.slane %v1383_v13, %v3363_v7  ;;  %v1954_v39 = vcombine.high %v1952_v1, %v1952_v1  ;;  %v1994_v6 = vrot.slane %v3490_v27, %v3343_v47  ;;  %v2066_v42 = vrot.slane %v2058_v32, %v3343_v47  ;;  %v55_v32 = vld [vmem:[%s4020_s1 + $0x180] sm:$0xff] }
  0xa1   :  { %v2073_v41 = vrot.slane %v2059_v33, %v3343_v47  ;;  %v1953_v46 = vcombine.high %v1945_v31, %v1945_v31  ;;  %v1913_v50 = vrot.slane %v1899_v34, %v3343_v47  ;;  %v1914_v51 = vcombine.high %v1906_v35, %v1906_v35 }
  0xa2   :  { %3020 = vmatmul.mubr.msk.f32.gmra.mrb[2].mxu0 %vm479_vm4, %v478_v37  ;;  %v3509_v45 = vcombine.low %v1391_v38, %v1398_v25  ;;  %v1961_v52 = vrot.slane %v1945_v31, %v3343_v47  ;;  %v3175_v18 = vpack.c.bf16 %v48_v44, %v47_v36  ;;  %v1982_v49 = vrot.slane %v1954_v39, %v3343_v47 }
  0xa3   :  { %3170 = vmatpush3.bf16.msra.mxu0 %v3167_v59  ;;  %v2074_v48 = vcombine.low %v2066_v42, %v2073_v41  ;;  %v2002_v53 = vcombine.high %v1994_v6, %v1994_v6  ;;  %v2009_v54 = vrot.slane %v1994_v6, %v3343_v47  ;;  %v1968_v58 = vrot.slane %v1952_v1, %v3343_v47 }
  0xa4   :  { %3172 = vmatprep.subr.bf16.mxu0 %v3171_v28  ;;  %v1975_v59 = vrot.slane %v1953_v46, %v3343_v47  ;;  %v1928_v61 = vrot.slane %v1913_v50, %v3343_v47  ;;  %v1935_v62 = vrot.slane %v1914_v51, %v3343_v47  ;;  %v1983_v63 = vcombine.high %v1961_v52, %v1961_v52 }
  0xa5   :  { %3102 = vmatprep.mubr.f32.mxu0 %v2074_v48  ;;  %v3179_v2 = vpack.c.bf16 %v50_v57, %v49_v55  ;;  %v1986_v0 = vcombine.high %v1982_v49, %v1982_v49  ;;  %v2023_v9 = vrot.slane %v2002_v53, %v3343_v47  ;;  %v2024_v5 = vcombine.high %v2009_v54, %v2009_v54  ;;  %v58_v55 = vld [vmem:[%s4021_s2] sm:$0xff]  ;;  %v59_v57 = vld [vmem:[%s4021_s2 + $0x8] sm:$0xff] }
  0xa6   :  { %v1921_v40 = vrot.slane %v1906_v35, %v3343_v47  ;;  %v1984_v10 = vcombine.high %v1968_v58, %v1968_v58  ;;  %v1985_v12 = vcombine.high %v1975_v59, %v1975_v59  ;;  %v3183_v13 = vpack.c.bf16 %v52_v4, %v51_v3  ;;  %v2923_v4 = vld [vmem:[%s4020_s1 + $0x80] ss:$0 sm:$0xff] }
  0xa7   :  { %3174 = vmatpush3.bf16.msra.mxu0 %v3171_v28  ;;  %v2077_v15 = vcombine.low %v1928_v61, %v1961_v52  ;;  %v2078_v8 = vcombine.low %v1975_v59, %v1983_v63  ;;  %v2126_v17 = vcombine.low %v1986_v0, %v2009_v54  ;;  %v2127_v19 = vcombine.low %v2023_v9, %v2024_v5  ;;  %v28_v61 = vld [vmem:[%s4020_s1 + $0x88] sm:$0xff]  ;;  %v2936_v5 = vld [vmem:[%s4020_s1 + $0x190] ss:$0 sm:$0xff] }
  0xa8   :  { %3176 = vmatprep.subr.bf16.mxu0 %v3175_v18  ;;  %v2075_v30 = vcombine.low %v1921_v40, %v1935_v62  ;;  %v2935_v1 = vcombine.high %v1921_v40, %v1935_v62  ;;  %v1987_v20 = vcombine.high %v3490_v27, %v3490_v27  ;;  %v2124_v14 = vcombine.low %v1985_v12, %v1968_v58  ;;  %v56_v27 = vld [vmem:[%s4020_s1 + $0x188] sm:$0xff]  ;;  %v29_v62 = vld [vmem:[%s4020_s1 + $0x90] sm:$0xff] }
  0xa9   :  { %v2125_v21 = vcombine.low %v1982_v49, %v1984_v10  ;;  %v3187_v22 = vpack.c.bf16 %v54_v16, %v53_v11  ;;  %v2099_v25 = vrot.slane %v2077_v15, %v3343_v47  ;;  %v2106_v28 = vrot.slane %v2078_v8, %v3343_v47 }
  0xaa   :  { %v2085_v23 = vrot.slane %v2075_v30, %v3343_v47  ;;  %v2092_v24 = vrot.slane %v2935_v1, %v3343_v47  ;;  %v2148_v31 = vrot.slane %v2126_v17, %v3343_v47  ;;  %v2155_v33 = vrot.slane %v2127_v19, %v3343_v47 }
  0xab   :  { %3178 = vmatpush3.bf16.msra.mxu0 %v3175_v18  ;;  %v2001_v34 = vrot.slane %v1987_v20, %v3343_v47  ;;  %v2134_v35 = vrot.slane %v2124_v14, %v3343_v47  ;;  %v2141_v37 = vrot.slane %v2125_v21, %v3343_v47  ;;  %v2108_v39 = vcombine.low %v2099_v25, %v2106_v28 }
  0xac   :  { %3180 = vmatprep.subr.bf16.mxu0 %v3179_v2  ;;  %v2107_v38 = vcombine.low %v2085_v23, %v2092_v24  ;;  %v2025_v6 = vcombine.high %v2023_v9, %v2023_v9  ;;  %v3191_v42 = vpack.c.bf16 %v56_v27, %v55_v32  ;;  %v2157_v41 = vcombine.low %v2148_v31, %v2155_v33 }
  0xad   :  { %v2016_v36 = vrot.slane %v2001_v34, %v3343_v47  ;;  %v2156_v44 = vcombine.low %v2134_v35, %v2141_v37  ;;  %v2122_v48 = vrot.slane %v2108_v39, %v3343_v47  ;;  %v3134_v58 = vpack.c.bf16 %v59_v57, %v58_v55 }
  0xae   :  { %v2115_v46 = vrot.slane %v2107_v38, %v3343_v47  ;;  %v2171_v51 = vrot.slane %v2157_v41, %v3343_v47  ;;  %v3245_v59 = vmov 0.0|0.0   ;;  %v3246_v63 = vmov 0.0  }
  0xaf   :  { %3182 = vmatpush3.bf16.msra.mxu0 %v3179_v2  ;;  %v2173_v50 = vcombine.low %v2025_v6, %v2016_v36  ;;  %v2164_v52 = vrot.slane %v2156_v44, %v3343_v47  ;;  %3133 = vmatprep.subr.bf16.mxu1 %v3245_v59  ;;  %v3580_v2 = vld [vmem:[%s4021_s2 + $0x10] sm:$0xff]  ;;  %v3582_v3 = vpack.c.bf16 %v29_v62, %v28_v61 }
  0xb0   :  { %3184 = vmatprep.subr.bf16.mxu0 %v3183_v13  ;;  %v2123_v18 = vcombine.low %v2115_v46, %v2122_v48  ;;  %3135 = vmatpush3.bf16.msra.mxu1 %v3134_v58  ;;  %v806_v0 = vcombine.high %v2923_v4, %v2923_v4  ;;  %v813_v9 = vrot.slane %v2923_v4, %v3343_v47 }
  0xb1   :  { %v2180_v49 = vrot.slane %v2173_v50, %v3343_v47  ;;  %v2172_v53 = vcombine.low %v2164_v52, %v2171_v51  ;;  %3026 = vmatprep.subr.mxu1 %v3246_v63  ;;  %3028 = vmatprep.mubr.msk.f32.mxu1 %vm3247_vm7, %v3246_v63  ;;  %v2481_v10 = vcombine.high %v2936_v5, %v2936_v5 }
  0xb2   :  { %v820_v40 = vrot.slane %v806_v0, %v3343_v47  ;;  %v2488_v12 = vrot.slane %v2936_v5, %v3343_v47  ;;  %v1283_v1 = vcombine.high %v3391_v26, %v3391_v26  ;;  %v3601_v15 = vrot.slane %v813_v9, %v3343_v47 }
  0xb3   :  { %3186 = vmatpush3.bf16.msra.mxu0 %v3183_v13  ;;  %v2187_v54 = vrot.slane %v2180_v49, %v3343_v47  ;;  %v821_v13 = vcombine.high %v813_v9, %v813_v9  ;;  %v2495_v8 = vrot.slane %v2481_v10, %v3343_v47  ;;  %v3615_v20 = vrot.slane %v3391_v26, %v3363_v7 }
  0xb4   :  { %3188 = vmatprep.subr.bf16.mxu0 %v3187_v22  ;;  %3027 = vmatpush3.msk.msra.mxu1 %vm1177_vm6, %v3580_v2  ;;  %v822_v30 = vcombine.high %v820_v40, %v820_v40  ;;  %v2496_v11 = vcombine.high %v2488_v12, %v2488_v12  ;;  %v3605_v16 = vrot.slane %v820_v40, %v3343_v47 }
  0xb5   :  { %3137 = vmatprep.subr.bf16.mxu1 %v3582_v3  ;;  %v3608_v17 = vrot.slane %v821_v13, %v3343_v47  ;;  %v3618_v14 = vrot.slane %v2488_v12, %v3343_v47  ;;  %v3621_v21 = vrot.slane %v1283_v1, %v3363_v7  ;;  %v3625_v23 = vcombine.high %v3601_v15, %v3601_v15 }
  0xb6   :  { %v3611_v19 = vrot.slane %v822_v30, %v3343_v47  ;;  %v3628_v24 = vrot.slane %v2496_v11, %v3343_v47  ;;  %v2497_v25 = vcombine.high %v2495_v8, %v2495_v8  ;;  %v3633_v26 = vcombine.high %v3605_v16, %v3605_v16 }
  0xb7   :  { %3190 = vmatpush3.bf16.msra.mxu0 %v3187_v22  ;;  %v3637_v32 = vcombine.high %v3608_v17, %v3608_v17  ;;  %v3645_v37 = vrot.slane %v2495_v8, %v3343_v47 }
  0xb8   :  { %3192 = vmatprep.subr.bf16.mxu0 %v3191_v42  ;;  %v3642_v35 = vcombine.high %v3611_v19, %v3611_v19  ;;  %v3658_v46 = vcombine.high %v3628_v24, %v3628_v24  ;;  %v3661_v48 = vrot.slane %v2497_v25, %v3343_v47 }
  0xbb   :  { %3194 = vmatpush3.bf16.msra.mxu0 %v3191_v42  ;;  %v3651_v42 = vcombine.high %v3618_v14, %v3618_v14 }
  0xbe   :  { %3103 = vmatmul.mubr.f32.vlgmr.msra.gmra.mrb[4].mxu0 %v2123_v18 }
  0xbf   :  { %3105 = vmatprep.mubr.f32.mxu0 %v2172_v53 }
  0xc2   :  { %3106 = vmatmul.mubr.f32.gmra.mrb[6].mxu0 %v2187_v54 }
 0x171   :  { %v3018_v22 = vpop.f32.mrb[0].mxu0 }
 0x172   :  { %v626_v28 = vcombine.high %v3018_v22, %v3018_v22  ;;  %v633_v31 = vrot.slane %v3018_v22, %v3343_v47  ;;  %v554_v27 = vpop.f32.mrb[1].mxu0 }
 0x173   :  { %v577_v33 = vcombine.high %v554_v27, %v554_v27  ;;  %v584_v34 = vrot.slane %v554_v27, %v3343_v47 }
 0x174   :  { %v640_v38 = vrot.slane %v626_v28, %v3343_v47  ;;  %v641_v39 = vcombine.high %v633_v31, %v633_v31  ;;  %v649_v6 = vrot.slane %v633_v31, %v3343_v47 }
 0x175   :  { %v591_v41 = vrot.slane %v577_v33, %v3343_v47  ;;  %v592_v36 = vcombine.high %v584_v34, %v584_v34  ;;  %v3654_v44 = vpop.f32.mrb[2].mxu0  ;;  %v600_v55 = vrot.slane %v584_v34, %v3343_v47 }
 0x176   :  { %v642_v50 = vcombine.high %v640_v38, %v640_v38  ;;  %v656_v51 = vrot.slane %v640_v38, %v3343_v47  ;;  %v663_v52 = vrot.slane %v641_v39, %v3343_v47  ;;  %v671_v18 = vcombine.high %v649_v6, %v649_v6  ;;  %v3665_v49 = vpop.f32.mrb[3].mxu0 }
 0x177   :  { %v871_v53 = vadd.f32 %v3601_v15, %v649_v6  ;;  %v593_v54 = vcombine.high %v591_v41, %v591_v41  ;;  %v607_v57 = vrot.slane %v591_v41, %v3343_v47  ;;  %v614_v5 = vrot.slane %v592_v36, %v3343_v47 }
 0x178   :  { %v3671_v58 = vrot.slane %v642_v50, %v3343_v47  ;;  %v672_v61 = vcombine.high %v656_v51, %v656_v51  ;;  %v673_v62 = vcombine.high %v663_v52, %v663_v52  ;;  %v872_v4 = vadd.f32 %v3608_v17, %v663_v52 }
 0x179   :  { %v873_v0 = vadd.f32 %v3625_v23, %v671_v18  ;;  %v875_v9 = vadd.f32 %v3605_v16, %v656_v51  ;;  %v621_v40 = vrot.slane %v593_v54, %v3343_v47  ;;  %v901_v30 = vmax.f32 %v871_v53, 0.0 }
 0x17a   :  { %v874_v10 = vadd.f32 %v3637_v32, %v673_v62  ;;  %v876_v12 = vadd.f32 %v3611_v19, %v3671_v58  ;;  %v877_v13 = vadd.f32 %v3633_v26, %v672_v61  ;;  %v902_v1 = vmax.f32 %v872_v4, 0.0 }
 0x17b   :  { %v903_v8 = vmax.f32 %v873_v0, 0.0  ;;  %v905_v11 = vmax.f32 %v875_v9, 0.0  ;;  %v622_v22 = vcombine.high %v600_v55, %v600_v55  ;;  %v623_v27 = vcombine.high %v607_v57, %v607_v57 }
 0x17c   :  { %v904_v25 = vmax.f32 %v874_v10, 0.0  ;;  %v906_v28 = vmax.f32 %v876_v12, 0.0  ;;  %v907_v31 = vmax.f32 %v877_v13, 0.0  ;;  %v1002_v33 = vcombine.low %v901_v30, %v902_v1 }
 0x17d   :  { %v624_v34 = vcombine.high %v614_v5, %v614_v5  ;;  %v625_v38 = vcombine.high %v621_v40, %v621_v40  ;;  %v863_v39 = vadd.f32 %v3601_v15, %v600_v55  ;;  %v864_v50 = vadd.f32 %v3608_v17, %v614_v5 }
 0x17e   :  { %v1003_v6 = vcombine.low %v903_v8, %v904_v25  ;;  %v1004_v41 = vcombine.low %v905_v11, %v906_v28  ;;  %v1032_v36 = vrot.slane %v907_v31, %v3343_v47  ;;  %v1011_v51 = vrot.slane %v1002_v33, %v3343_v47 }
 0x17f   :  { %v865_v52 = vadd.f32 %v3625_v23, %v622_v22  ;;  %v866_v18 = vadd.f32 %v3637_v32, %v624_v34  ;;  %v867_v53 = vadd.f32 %v3605_v16, %v607_v57  ;;  %v868_v55 = vadd.f32 %v3611_v19, %v621_v40 }
 0x180   :  { %v1018_v54 = vrot.slane %v1003_v6, %v3343_v47  ;;  %v1025_v61 = vrot.slane %v1004_v41, %v3343_v47  ;;  %v869_v62 = vadd.f32 %v3633_v26, %v623_v27  ;;  %v870_v4 = vadd.f32 %v3642_v35, %v625_v38 }
 0x181   :  { %v893_v0 = vmax.f32 %v863_v39, 0.0  ;;  %v894_v9 = vmax.f32 %v864_v50, 0.0  ;;  %v3696_v5 = vcombine.high %v3645_v37, %v3645_v37  ;;  %v895_v13 = vmax.f32 %v865_v52, 0.0 }
 0x182   :  { %v1033_v10 = vcombine.low %v1011_v51, %v1018_v54  ;;  %v1034_v12 = vcombine.low %v1025_v61, %v1032_v36  ;;  %v896_v57 = vmax.f32 %v866_v18, 0.0  ;;  %v897_v30 = vmax.f32 %v867_v53, 0.0 }
 0x183   :  { %v898_v1 = vmax.f32 %v868_v55, 0.0  ;;  %v899_v8 = vmax.f32 %v869_v62, 0.0  ;;  %v900_v11 = vmax.f32 %v870_v4, 0.0  ;;  %v674_v40 = vcombine.high %v3671_v58, %v3671_v58 }
 0x184   :  { %v954_v22 = vcombine.low %v895_v13, %v896_v57  ;;  %v724_v25 = vcombine.high %v3654_v44, %v3654_v44  ;;  %v3704_v28 = vcombine.high %v3661_v48, %v3661_v48  ;;  %v953_v31 = vcombine.low %v893_v0, %v894_v9 }
 0x185   :  { %v955_v27 = vcombine.low %v897_v30, %v898_v1  ;;  %v956_v33 = vcombine.low %v899_v8, %v900_v11  ;;  %v731_v34 = vrot.slane %v3654_v44, %v3343_v47  ;;  %v1041_v38 = vrot.slane %v1033_v10, %v3343_v47 }
 0x186   :  { %v1048_v39 = vrot.slane %v1034_v12, %v3343_v47  ;;  %v738_v58 = vrot.slane %v724_v25, %v3343_v47  ;;  %v675_v6 = vcombine.high %v3665_v49, %v3665_v49  ;;  %v970_v52 = vrot.slane %v954_v22, %v3343_v47 }
 0x187   :  { %v977_v41 = vrot.slane %v955_v27, %v3343_v47  ;;  %v984_v36 = vrot.slane %v956_v33, %v3343_v47  ;;  %v739_v50 = vcombine.high %v731_v34, %v731_v34  ;;  %v747_v51 = vrot.slane %v731_v34, %v3343_v47 }
 0x188   :  { %v740_v18 = vcombine.high %v738_v58, %v738_v58  ;;  %v754_v44 = vrot.slane %v738_v58, %v3343_v47  ;;  %v682_v53 = vrot.slane %v3665_v49, %v3343_v47  ;;  %v3726_v4 = vcombine.low %v1041_v38, %v1048_v39 }
 0x189   :  { %v3720_v54 = vcombine.low %v977_v41, %v984_v36  ;;  %v761_v61 = vrot.slane %v739_v50, %v3343_v47  ;;  %v769_v55 = vcombine.high %v747_v51, %v747_v51  ;;  %v3724_v62 = vadd.f32 %v3608_v17, %v747_v51 }
 0x18a   :  { %v963_v0 = vrot.slane %v953_v31, %v3343_v47  ;;  %v768_v9 = vrot.slane %v740_v18, %v3343_v47  ;;  %v689_v10 = vrot.slane %v675_v6, %v3343_v47  ;;  %v891_v57 = vadd.f32 %v3611_v19, %v754_v44 }
 0x18b   :  { %v770_v12 = vcombine.high %v761_v61, %v761_v61  ;;  %v888_v13 = vadd.f32 %v3625_v23, %v761_v61  ;;  %v889_v49 = vadd.f32 %v3637_v32, %v769_v55  ;;  %v1000_v1 = vrot.slane %v3720_v54, %v3343_v47 }
 0x18c   :  { %v3734_v30 = vcombine.low %v963_v0, %v970_v52  ;;  %v892_v8 = vadd.f32 %v3633_v26, %v768_v9  ;;  %v690_v11 = vcombine.high %v682_v53, %v682_v53  ;;  %v917_v25 = vmax.f32 %v3724_v62, 0.0 }
 0x18d   :  { %v890_v22 = vadd.f32 %v3605_v16, %v770_v12  ;;  %v918_v31 = vmax.f32 %v888_v13, 0.0  ;;  %v919_v27 = vmax.f32 %v889_v49, 0.0  ;;  %v691_v34 = vcombine.high %v689_v10, %v689_v10 }
 0x18e   :  { %v922_v33 = vmax.f32 %v892_v8, 0.0  ;;  %v698_v38 = vrot.slane %v682_v53, %v3343_v47  ;;  %v705_v39 = vrot.slane %v689_v10, %v3343_v47  ;;  %v921_v6 = vmax.f32 %v891_v57, 0.0 }
 0x18f   :  { %v920_v58 = vmax.f32 %v890_v22, 0.0  ;;  %v1100_v41 = vcombine.low %v918_v31, %v919_v27  ;;  %v712_v36 = vrot.slane %v690_v11, %v3343_v47  ;;  %v719_v50 = vrot.slane %v691_v34, %v3343_v47 }
 0x190   :  { %v720_v51 = vcombine.high %v698_v38, %v698_v38  ;;  %v721_v52 = vcombine.high %v705_v39, %v705_v39  ;;  %v878_v18 = vadd.f32 %v3601_v15, %v674_v40  ;;  %v1129_v61 = vrot.slane %v922_v33, %v3343_v47 }
 0x191   :  { %v1101_v44 = vcombine.low %v920_v58, %v921_v6  ;;  %v722_v55 = vcombine.high %v712_v36, %v712_v36  ;;  %v879_v62 = vadd.f32 %v3608_v17, %v698_v38  ;;  %v3104_v53 = vpop.f32.mrb[4].mxu0  ;;  %v723_v0 = vcombine.high %v719_v50, %v719_v50 }
 0x192   :  { %v880_v9 = vadd.f32 %v3625_v23, %v712_v36  ;;  %v881_v10 = vadd.f32 %v3637_v32, %v720_v51  ;;  %v883_v12 = vadd.f32 %v3611_v19, %v705_v39  ;;  %v3751_v13 = vpop.f32.mrb[5].mxu0  ;;  %v884_v57 = vadd.f32 %v3633_v26, %v719_v50 }
 0x193   :  { %v1122_v49 = vrot.slane %v1101_v44, %v3343_v47  ;;  %v882_v40 = vadd.f32 %v3605_v16, %v722_v55  ;;  %v885_v8 = vadd.f32 %v3642_v35, %v721_v52  ;;  %v886_v17 = vadd.f32 %v3601_v15, %v723_v0 }
 0x194   :  { %v908_v11 = vmax.f32 %v878_v18, 0.0  ;;  %v909_v22 = vmax.f32 %v879_v62, 0.0  ;;  %v910_v31 = vmax.f32 %v880_v9, 0.0  ;;  %v1115_v23 = vrot.slane %v1100_v41, %v3343_v47 }
 0x195   :  { %v911_v32 = vmax.f32 %v881_v10, 0.0  ;;  %v912_v27 = vmax.f32 %v882_v40, 0.0  ;;  %v913_v19 = vmax.f32 %v883_v12, 0.0  ;;  %v3107_v33 = vpop.f32.mrb[6].mxu0  ;;  %v914_v34 = vmax.f32 %v884_v57, 0.0 }
 0x196   :  { %v915_v38 = vmax.f32 %v885_v8, 0.0  ;;  %v916_v39 = vmax.f32 %v886_v17, 0.0  ;;  %v1050_v58 = vcombine.low %v908_v11, %v909_v22  ;;  %v3759_v16 = vpop.f32.mrb[7].mxu0  ;;  %v3761_v26 = vcombine.low %v1122_v49, %v1129_v61 }
 0x197   :  { %v1051_v35 = vcombine.low %v910_v31, %v911_v32  ;;  %v1052_v6 = vcombine.low %v912_v27, %v913_v19  ;;  %v2330_v15 = vcombine.high %v3104_v53, %v3104_v53  ;;  %v2337_v41 = vrot.slane %v3104_v53, %v3343_v47 }
 0x198   :  { %v1053_v36 = vcombine.low %v914_v34, %v915_v38  ;;  %v1060_v50 = vrot.slane %v1050_v58, %v3343_v47  ;;  %v1099_v51 = vcombine.low %v916_v39, %v917_v25  ;;  %v2281_v55 = vcombine.high %v3751_v13, %v3751_v13 }
 0x199   :  { %v1067_v52 = vrot.slane %v1051_v35, %v3343_v47  ;;  %v1074_v18 = vrot.slane %v1052_v6, %v3343_v47  ;;  %v2344_v44 = vrot.slane %v2330_v15, %v3343_v47  ;;  %v2345_v0 = vcombine.high %v2337_v41, %v2337_v41 }
 0x19a   :  { %v1081_v61 = vrot.slane %v1053_v36, %v3343_v47  ;;  %v1108_v62 = vrot.slane %v1099_v51, %v3343_v47  ;;  %v2353_v9 = vrot.slane %v2337_v41, %v3343_v47  ;;  %v2288_v12 = vrot.slane %v3751_v13, %v3343_v47 }
 0x19b   :  { %v1082_v10 = vcombine.low %v1060_v50, %v1067_v52  ;;  %v2346_v25 = vcombine.high %v2344_v44, %v2344_v44  ;;  %v2360_v53 = vrot.slane %v2344_v44, %v3343_v47  ;;  %v2367_v57 = vrot.slane %v2345_v0, %v3343_v47 }
 0x19c   :  { %v1083_v49 = vcombine.low %v1074_v18, %v1081_v61  ;;  %v3776_v40 = vcombine.low %v1108_v62, %v1115_v23  ;;  %v2375_v8 = vcombine.high %v2353_v9, %v2353_v9  ;;  %v2546_v31 = vadd.f32 %v3618_v14, %v2353_v9 }
 0x19d   :  { %v1090_v17 = vrot.slane %v1082_v10, %v3343_v47  ;;  %v3781_v11 = vrot.slane %v2346_v25, %v3343_v47  ;;  %v2376_v22 = vcombine.high %v2360_v53, %v2360_v53  ;;  %v2377_v27 = vcombine.high %v2367_v57, %v2367_v57 }
 0x19e   :  { %v1097_v32 = vrot.slane %v1083_v49, %v3343_v47  ;;  %v2547_v19 = vadd.f32 %v3628_v24, %v2367_v57  ;;  %v2548_v13 = vadd.f32 %v3651_v42, %v2375_v8  ;;  %v993_v23 = vrot.slane %v3734_v30, %v3343_v47 }
 0x19f   :  { %v2550_v34 = vadd.f32 %v3645_v37, %v2360_v53  ;;  %v2551_v38 = vadd.f32 %v3618_v14, %v3781_v11  ;;  %v2552_v39 = vadd.f32 %v3628_v24, %v2376_v22  ;;  %v2549_v35 = vadd.f32 %v3658_v46, %v2377_v27 }
 0x1a0   :  { %v3793_v58 = vcombine.low %v1090_v17, %v1097_v32  ;;  %v2572_v6 = vmax.f32 %v2546_v31, 0.0  ;;  %v2573_v15 = vmax.f32 %v2547_v19, 0.0  ;;  %v3799_v36 = vcombine.low %v993_v23, %v1000_v1 }
 0x1a1   :  { %v1145_v30 = vrot.slane %v3761_v26, %v3343_v47  ;;  %v2378_v50 = vcombine.high %v3781_v11, %v3781_v11  ;;  %v2574_v51 = vmax.f32 %v2548_v13, 0.0  ;;  %v2575_v41 = vmax.f32 %v2549_v35, 0.0 }
 0x1a2   :  { %v2665_v52 = vcombine.low %v2572_v6, %v2573_v15  ;;  %v2295_v18 = vrot.slane %v2281_v55, %v3343_v47  ;;  %v2296_v44 = vcombine.high %v2288_v12, %v2288_v12  ;;  %v2576_v61 = vmax.f32 %v2550_v34, 0.0 }
 0x1a3   :  { %v2577_v62 = vmax.f32 %v2551_v38, 0.0  ;;  %v2578_v0 = vmax.f32 %v2552_v39, 0.0  ;;  %v2304_v9 = vrot.slane %v2288_v12, %v3343_v47  ;;  %v2666_v54 = vcombine.low %v2574_v51, %v2575_v41 }
 0x1a4   :  { %v2297_v1 = vcombine.high %v2295_v18, %v2295_v18  ;;  %v2311_v10 = vrot.slane %v2295_v18, %v3343_v47  ;;  %v2434_v25 = vrot.slane %v3107_v33, %v3343_v47  ;;  %v2673_v53 = vrot.slane %v2665_v52, %v3343_v47 }
 0x1a5   :  { %v2318_v49 = vrot.slane %v2296_v44, %v3343_v47  ;;  %v2326_v57 = vcombine.high %v2304_v9, %v2304_v9  ;;  %v2538_v8 = vadd.f32 %v3618_v14, %v2304_v9  ;;  %v2680_v55 = vrot.slane %v2666_v54, %v3343_v47 }
 0x1a6   :  { %v2325_v17 = vrot.slane %v2297_v1, %v3343_v47  ;;  %v2327_v22 = vcombine.high %v2311_v10, %v2311_v10  ;;  %v2542_v12 = vadd.f32 %v3645_v37, %v2311_v10  ;;  %v2687_v31 = vrot.slane %v2576_v61, %v3343_v47 }
 0x1a7   :  { %v2328_v32 = vcombine.high %v2318_v49, %v2318_v49  ;;  %v2539_v27 = vadd.f32 %v3628_v24, %v2318_v49  ;;  %v2540_v33 = vadd.f32 %v3651_v42, %v2326_v57  ;;  %v2688_v19 = vcombine.low %v2673_v53, %v2680_v55 }
 0x1a8   :  { %v3818_v13 = vcombine.low %v2577_v62, %v2578_v0  ;;  %v2543_v23 = vadd.f32 %v3661_v48, %v2325_v17  ;;  %v2564_v34 = vmax.f32 %v2538_v8, 0.0  ;;  %v3823_v39 = vadd.f32 %v3696_v5, %v2327_v22 }
 0x1a9   :  { %v2541_v38 = vadd.f32 %v3658_v46, %v2328_v32  ;;  %v2565_v35 = vmax.f32 %v2539_v27, 0.0  ;;  %v2566_v6 = vmax.f32 %v2540_v33, 0.0  ;;  %v2695_v15 = vrot.slane %v2688_v19, %v3343_v47 }
 0x1aa   :  { %v2568_v51 = vmax.f32 %v2542_v12, 0.0  ;;  %v2569_v41 = vmax.f32 %v2543_v23, 0.0  ;;  %v2435_v52 = vcombine.high %v2434_v25, %v2434_v25  ;;  %v2442_v61 = vrot.slane %v2434_v25, %v3343_v47 }
 0x1ab   :  { %v2567_v18 = vmax.f32 %v2541_v38, 0.0  ;;  %v2616_v44 = vcombine.low %v2564_v34, %v2565_v35  ;;  %v2379_v62 = vcombine.high %v3759_v16, %v3759_v16  ;;  %v2702_v0 = vrot.slane %v2687_v31, %v3343_v47 }
 0x1ac   :  { %v3830_v9 = vcombine.low %v2568_v51, %v2569_v41  ;;  %v2449_v54 = vrot.slane %v2435_v52, %v3343_v47  ;;  %v2386_v1 = vrot.slane %v3759_v16, %v3343_v47  ;;  %v2329_v10 = vcombine.high %v2325_v17, %v2325_v17 }
 0x1ad   :  { %v2570_v53 = vmax.f32 %v3823_v39, 0.0  ;;  %v2617_v49 = vcombine.low %v2566_v6, %v2567_v18  ;;  %v2393_v57 = vrot.slane %v2379_v62, %v3343_v47  ;;  %v3837_v8 = vcombine.low %v2695_v15, %v2702_v0 }
 0x1ae   :  { %v2562_v25 = vadd.f32 %v3658_v46, %v2442_v61  ;;  %v2563_v55 = vadd.f32 %v3645_v37, %v2449_v54  ;;  %v2394_v22 = vcombine.high %v2386_v1, %v2386_v1  ;;  %v2626_v12 = vrot.slane %v2616_v44, %v3343_v47 }
 0x1af   :  { %v2633_v31 = vrot.slane %v2617_v49, %v3343_v47  ;;  %v2395_v32 = vcombine.high %v2393_v57, %v2393_v57  ;;  %v2402_v16 = vrot.slane %v2386_v1, %v3343_v47  ;;  %v2640_v17 = vrot.slane %v3830_v9, %v3343_v47 }
 0x1b0   :  { %v2589_v27 = vmax.f32 %v2563_v55, 0.0  ;;  %v2409_v33 = vrot.slane %v2393_v57, %v3343_v47  ;;  %v2416_v19 = vrot.slane %v2394_v22, %v3343_v47  ;;  %v2545_v38 = vadd.f32 %v3704_v28, %v2329_v10 }
 0x1b1   :  { %v2423_v23 = vrot.slane %v2395_v32, %v3343_v47  ;;  %v2424_v34 = vcombine.high %v2402_v16, %v2402_v16  ;;  %v2553_v39 = vadd.f32 %v3651_v42, %v2378_v50  ;;  %v2588_v35 = vmax.f32 %v2562_v25, 0.0 }
 0x1b2   :  { %v2425_v6 = vcombine.high %v2409_v33, %v2409_v33  ;;  %v2426_v15 = vcombine.high %v2416_v19, %v2416_v19  ;;  %v2554_v51 = vadd.f32 %v3658_v46, %v2402_v16  ;;  %v2648_v41 = vcombine.low %v2626_v12, %v2633_v31 }
 0x1b3   :  { %v2427_v52 = vcombine.high %v2423_v23, %v2423_v23  ;;  %v2555_v18 = vadd.f32 %v3645_v37, %v2416_v19  ;;  %v2556_v44 = vadd.f32 %v3661_v48, %v2424_v34  ;;  %v2775_v61 = vrot.slane %v2589_v27, %v3343_v47 }
 0x1b4   :  { %v2557_v62 = vadd.f32 %v3696_v5, %v2426_v15  ;;  %v2558_v11 = vadd.f32 %v3704_v28, %v2409_v33  ;;  %v2559_v50 = vadd.f32 %v3618_v14, %v2423_v23  ;;  %v2560_v0 = vadd.f32 %v3628_v24, %v2425_v6 }
 0x1b5   :  { %v2561_v9 = vadd.f32 %v3651_v42, %v2427_v52  ;;  %v2571_v54 = vmax.f32 %v2545_v38, 0.0  ;;  %v2579_v46 = vmax.f32 %v2553_v39, 0.0  ;;  %v2580_v1 = vmax.f32 %v2554_v51, 0.0 }
 0x1b6   :  { %v2581_v10 = vmax.f32 %v2555_v18, 0.0  ;;  %v2582_v49 = vmax.f32 %v2556_v44, 0.0  ;;  %v2583_v37 = vmax.f32 %v2557_v62, 0.0  ;;  %v2584_v48 = vmax.f32 %v2558_v11, 0.0 }
 0x1b7   :  { %v2585_v57 = vmax.f32 %v2559_v50, 0.0  ;;  %v2586_v25 = vmax.f32 %v2560_v0, 0.0  ;;  %v2587_v55 = vmax.f32 %v2561_v9, 0.0  ;;  %v2619_v5 = vcombine.low %v2570_v53, %v2571_v54 }
 0x1b8   :  { %v2705_v22 = vcombine.low %v2579_v46, %v2580_v1  ;;  %v2706_v28 = vcombine.low %v2581_v10, %v2582_v49  ;;  %v2714_v14 = vrot.slane %v3818_v13, %v3343_v47  ;;  %v2707_v24 = vcombine.low %v2583_v37, %v2584_v48 }
 0x1b9   :  { %v2753_v12 = vcombine.low %v2585_v57, %v2586_v25  ;;  %v2754_v42 = vcombine.low %v2587_v55, %v2588_v35  ;;  %v1138_v31 = vrot.slane %v3776_v40, %v3343_v47  ;;  %v2647_v32 = vrot.slane %v2619_v5, %v3343_v47 }
 0x1ba   :  { %v2721_v16 = vrot.slane %v2705_v22, %v3343_v47  ;;  %v2728_v27 = vrot.slane %v2706_v28, %v3343_v47  ;;  %v1152_v53 = vsel %vm1151_vm8, %v3799_v36, -inf  ;;  %v2735_v33 = vrot.slane %v2707_v24, %v3343_v47 }
 0x1bb   :  { %v2761_v19 = vrot.slane %v2753_v12, %v3343_v47  ;;  %v2768_v13 = vrot.slane %v2754_v42, %v3343_v47  ;;  %v1146_v23 = vcombine.low %v1138_v31, %v1145_v30  ;;  %v2649_v40 = vcombine.low %v2640_v17, %v2647_v32  ;;  %v30_v42 = vld [vmem:[%s4020_s1 + $0x98] sm:$0xff] }
 0x1bc   :  { %v2736_v34 = vcombine.low %v2714_v14, %v2721_v16  ;;  %v1154_v38 = vsel %vm1153_vm9, %v3726_v4, -inf  ;;  %v1162_v39 = vsel %vm1151_vm8, %v3793_v58, -inf  ;;  %v2737_v35 = vcombine.low %v2728_v27, %v2735_v33 }
 0x1bd   :  { %v2776_v36 = vcombine.low %v2761_v19, %v2768_v13  ;;  %v1155_v6 = vmax.f32 %v1152_v53, %v1154_v38  ;;  %v1163_v15 = vsel %vm1153_vm9, %v1146_v23, -inf  ;;  %v2656_v51 = vrot.slane %v2648_v41, %v3343_v47 }
 0x1be   :  { %v2790_v52 = vrot.slane %v2775_v61, %v3343_v47  ;;  %v2663_v26 = vrot.slane %v2649_v40, %v3343_v47  ;;  %v1164_v30 = vmax.f32 %v1162_v39, %v1163_v15  ;;  %v2744_v17 = vrot.slane %v2736_v34, %v3343_v47  ;;  %v32_v40 = vld [vmem:[%s4020_s1 + $0xa8] sm:$0xff]  ;;  %v33_v34 = vld [vmem:[%s4020_s1 + $0xb0] sm:$0xff]  ;;  %v35_v15 = vld [vmem:[%s4020_s1 + $0xc0] sm:$0xff] }
 0x1bf   :  { %v2751_v18 = vrot.slane %v2737_v35, %v3343_v47  ;;  %v2783_v4 = vrot.slane %v2776_v36, %v3343_v47  ;;  %v1156_v44 = vrot.slane %v1155_v6, 4  ;;  %v1299_v58 = vcombine.high %v3621_v21, %v3621_v21 }
 0x1c0   :  { %v1165_v62 = vrot.slane %v1164_v30, 4  ;;  %v2664_v11 = vcombine.low %v2656_v51, %v2663_v26  ;;  %v1298_v61 = vcombine.high %v3615_v20, %v3615_v20  ;;  %v2798_v9 = vsel %vm2797_vm10, %v3837_v8, -inf }
 0x1c1   :  { %v2752_v50 = vcombine.low %v2744_v17, %v2751_v18  ;;  %v2791_v0 = vcombine.low %v2783_v4, %v2790_v52  ;;  %v1157_v41 = vmax.f32 %v1155_v6, %v1156_v44  ;;  %v1350_v37 = vcombine.low %v3621_v21, %v1299_v58  ;;  %v31_v21 = vld [vmem:[%s4020_s1 + $0xa0] sm:$0xff]  ;;  %v34_v6 = vld [vmem:[%s4020_s1 + $0xb8] sm:$0xff]  ;;  %v37_v17 = vld [vmem:[%s4020_s1 + $0xd0] sm:$0xff] }
 0x1c2   :  { %v1166_v54 = vmax.f32 %v1164_v30, %v1165_v62  ;;  %v2796_v46 = vsel %vm1151_vm8, %v2664_v11, -inf  ;;  %v1349_v5 = vcombine.low %v3615_v20, %v1298_v61  ;;  %v3140_v33 = vpack.c.bf16 %v31_v21, %v30_v42  ;;  %v36_v30 = vld [vmem:[%s4020_s1 + $0xc8] sm:$0xff]  ;;  %v38_v4 = vld [vmem:[%s4020_s1 + $0xd8] sm:$0xff]  ;;  %v39_v44 = vld [vmem:[%s4020_s1 + $0xe0] sm:$0xff] }
 0x1c3   :  { %v2806_v47 = vsel %vm1151_vm8, %v2752_v50, -inf  ;;  %v1158_v1 = vrot.slane %v1157_v41, 2  ;;  %v2799_v10 = vmax.f32 %v2796_v46, %v2798_v9  ;;  %v2807_v49 = vsel %vm2797_vm10, %v2791_v0, -inf }
 0x1c4   :  { %v1167_v48 = vrot.slane %v1166_v54, 2  ;;  %v2808_v57 = vmax.f32 %v2806_v47, %v2807_v49  ;;  %v1364_v12 = vrot.slane %v1350_v37, %v3363_v7  ;;  %v1357_v20 = vrot.slane %v1349_v5, %v3363_v7 }
 0x1c5   :  { %v1159_v25 = vmax.f32 %v1157_v41, %v1158_v1  ;;  %v2800_v55 = vrot.slane %v2799_v10, 4  ;;  %v3144_v36 = vpack.c.bf16 %v33_v34, %v32_v40  ;;  %v3152_v18 = vpack.c.bf16 %v37_v17, %v36_v30  ;;  %v61_v41 = vld [vmem:[%s4021_s2 + $0x18] sm:$0xff] }
 0x1c6   :  { %v1168_v22 = vmax.f32 %v1166_v54, %v1167_v48  ;;  %v2809_v28 = vrot.slane %v2808_v57, 4  ;;  %v1365_v23 = vcombine.low %v1357_v20, %v1364_v12  ;;  %v1333_v58 = vcombine.high %v3434_v29, %v3434_v29 }
 0x1c7   :  { %v1160_v8 = vrot.slane %v1159_v25, 1  ;;  %v2801_v14 = vmax.f32 %v2799_v10, %v2800_v55  ;;  %v3156_v62 = vpack.c.bf16 %v39_v44, %v38_v4  ;;  %v1348_v50 = vcombine.high %v3443_v60, %v3443_v60 }
 0x1c8   :  { %v1169_v24 = vrot.slane %v1168_v22, 1  ;;  %v2810_v31 = vmax.f32 %v2808_v57, %v2809_v28  ;;  %v1347_v11 = vrot.slane %v1333_v58, %v3363_v7  ;;  %v1741_v60 = vrot.slane %v3580_v2, 4  ;;  %v2930_v2 = vld [vmem:[%s4020_s1 + $0x108] ss:$0 sm:$0xff] }
 0x1c9   :  { %v2802_v32 = vrot.slane %v2801_v14, 2  ;;  %v1161_v16 = vmax.f32 %v1159_v25, %v1160_v8  ;;  %v1742_v61 = vrot.slane %v61_v41, 4  ;;  %v1584_v47 = vcombine.high %v2930_v2, %v2930_v2 }
 0x1ca   :  { %v1170_v27 = vmax.f32 %v1168_v22, %v1169_v24  ;;  %v2811_v53 = vrot.slane %v2810_v31, 2  ;;  %v1400_v0 = vcombine.low %v1348_v50, %v1347_v11  ;;  %v1591_v1 = vrot.slane %v2930_v2, %v3363_v7 }
 0x1cb   :  { %v2803_v19 = vmax.f32 %v2801_v14, %v2802_v32  ;;  %v1598_v49 = vrot.slane %v1584_v47, %v3363_v7 }
 0x1cc   :  { %v1174_v13 = vsel %vm1173_vm11, %v1170_v27, %v1161_v16  ;;  %v2812_v38 = vmax.f32 %v2810_v31, %v2811_v53  ;;  %v1407_v29 = vrot.slane %v1400_v0, %v3363_v7  ;;  %v1599_v57 = vcombine.high %v1591_v1, %v1591_v1 }
 0x1cd   :  { %3029 = vmatmul.mubr.msk.f32.vlgmr.msra.gmra.mrb[0].mxu1 %vm1151_vm8, %v1174_v13  ;;  %v2804_v39 = vrot.slane %v2803_v19, 1  ;;  %v1600_v24 = vcombine.high %v1598_v49, %v1598_v49 }
 0x1ce   :  { %3139 = vmatpush3.bf16.msra.mxu1 %v3582_v3  ;;  %3055 = vmatprep.mubr.msk.f32.mxu1 %vm1408_vm5, %v1365_v23  ;;  %v2813_v35 = vrot.slane %v2812_v38, 1  ;;  %v3148_v3 = vpack.c.bf16 %v35_v15, %v34_v6 }
 0x1cf   :  { %3141 = vmatprep.subr.bf16.mxu1 %v3140_v33  ;;  %v2805_v51 = vmax.f32 %v2803_v19, %v2804_v39 }
 0x1d0   :  { %v2814_v52 = vmax.f32 %v2812_v38, %v2813_v35 }
 0x1d2   :  { %3143 = vmatpush3.bf16.msra.mxu1 %v3140_v33  ;;  %v3925_v26 = vsel %vm1173_vm11, %v2814_v52, %v2805_v51 }
 0x1d3   :  { %3145 = vmatprep.subr.bf16.mxu1 %v3144_v36 }
 0x1d6   :  { %3147 = vmatpush3.bf16.msra.mxu1 %v3144_v36 }
 0x1d7   :  { %3149 = vmatprep.subr.bf16.mxu1 %v3148_v3 }
 0x1da   :  { %3151 = vmatpush3.bf16.msra.mxu1 %v3148_v3 }
 0x1db   :  { %3153 = vmatprep.subr.bf16.mxu1 %v3152_v18 }
 0x1de   :  { %3155 = vmatpush3.bf16.msra.mxu1 %v3152_v18 }
 0x1df   :  { %3157 = vmatprep.subr.bf16.mxu1 %v3156_v62 }
 0x1e2   :  { %3159 = vmatpush3.bf16.msra.mxu1 %v3156_v62 }
 0x1e3   :  { %3160 = vmatprep.subr.bf16.mxu1 %v3245_v59 }
 0x1e5   :  { %3056 = vmatmul.mubr.msk.f32.vlgmr.msra.gmra.mrb[2].mxu1 %vm1408_vm5, %v3413_v56  ;;  %v62_v56 = vld [vmem:[%s4021_s2 + $0x20] sm:$0xff] }
 0x1e6   :  { %3058 = vmatprep.mubr.msk.f32.mxu1 %vm1408_vm5, %v3509_v45  ;;  %v1744_v9 = vrot.slane %v62_v56, 4  ;;  %v1743_v45 = vsel %vm1177_vm6, %v1741_v60, %v1742_v61 }
 0x1e8   :  { %v1745_v54 = vsel %vm1177_vm6, %v1742_v61, %v1744_v9 }
 0x1e9   :  { %3059 = vmatmul.mubr.msk.f32.gmra.mrb[4].mxu1 %vm1408_vm5, %v1407_v29  ;;  %v3161_v46 = vpack.c.bf16 %v1745_v54, %v1743_v45 }
 0x1ea   :  { %3067 = vmatprep.mubr.msk.f32.mxu1 %vm3247_vm7, %v3246_v63 }
 0x1eb   :  { %3162 = vmatpush3.bf16.msra.mxu1 %v3161_v46 }
 0x1ec   :  { %3065 = vmatprep.subr.mxu1 %v3246_v63 }
 0x1ef   :  { %3066 = vmatpush3.msk.msra.mxu1 %vm1177_vm6, %v1744_v9 }
 0x1f0   :  { %3195 = vmatprep.subr.bf16.mxu1 %v3245_v59 }
 0x2b8   :  { %v3057_v10 = vpop.f32.mrb[2].mxu1 }
 0x2b9   :  { %v1523_v37 = vcombine.high %v3057_v10, %v3057_v10  ;;  %v1530_v48 = vrot.slane %v3057_v10, %v3363_v7  ;;  %v1483_v25 = vpop.f32.mrb[3].mxu1 }
 0x2ba   :  { %v1506_v55 = vcombine.high %v1483_v25, %v1483_v25  ;;  %v1513_v5 = vrot.slane %v1483_v25, %v3363_v7 }
 0x2bb   :  { %v1537_v59 = vrot.slane %v1523_v37, %v3363_v7  ;;  %v1538_v22 = vcombine.high %v1530_v48, %v1530_v48  ;;  %v1609_v28 = vadd.f32 %v1591_v1, %v1530_v48 }
 0x2bc   :  { %v1520_v8 = vrot.slane %v1506_v55, %v3363_v7  ;;  %v1521_v14 = vcombine.high %v1513_v5, %v1513_v5  ;;  %v1605_v12 = vadd.f32 %v1591_v1, %v1513_v5  ;;  %v3060_v42 = vpop.f32.mrb[4].mxu1 }
 0x2bd   :  { %v1539_v21 = vcombine.high %v1537_v59, %v1537_v59  ;;  %v1610_v31 = vadd.f32 %v1599_v57, %v1538_v22  ;;  %v1611_v32 = vadd.f32 %v1598_v49, %v1537_v59  ;;  %v1493_v20 = vpop.f32.mrb[5].mxu1  ;;  %v1623_v33 = vmax.f32 %v1609_v28, 0.0 }
 0x2be   :  { %v1522_v16 = vcombine.high %v1520_v8, %v1520_v8  ;;  %v1606_v27 = vadd.f32 %v1599_v57, %v1521_v14  ;;  %v1607_v53 = vadd.f32 %v1598_v49, %v1520_v8  ;;  %v1563_v23 = vrot.slane %v3060_v42, %v3363_v7 }
 0x2bf   :  { %v1624_v19 = vmax.f32 %v1610_v31, 0.0  ;;  %v1625_v13 = vmax.f32 %v1611_v32, 0.0  ;;  %v1619_v34 = vmax.f32 %v1605_v12, 0.0  ;;  %v1540_v39 = vcombine.high %v1493_v20, %v1493_v20 }
 0x2c0   :  { %v1608_v40 = vadd.f32 %v1600_v24, %v1522_v16  ;;  %v1620_v38 = vmax.f32 %v1606_v27, 0.0  ;;  %v1612_v35 = vadd.f32 %v1591_v1, %v1539_v21  ;;  %v1621_v6 = vmax.f32 %v1607_v53, 0.0 }
 0x2c1   :  { %v1664_v36 = vcombine.low %v1623_v33, %v1624_v19  ;;  %v1564_v15 = vcombine.high %v1563_v23, %v1563_v23  ;;  %v1547_v3 = vrot.slane %v1493_v20, %v3363_v7  ;;  %v1554_v30 = vrot.slane %v1540_v39, %v3363_v7 }
 0x2c2   :  { %v1622_v51 = vmax.f32 %v1608_v40, 0.0  ;;  %v1647_v52 = vcombine.low %v1619_v34, %v1620_v38  ;;  %v1678_v18 = vrot.slane %v1625_v13, %v3363_v7  ;;  %v1617_v4 = vadd.f32 %v1599_v57, %v1563_v23  ;;  %v64_v13 = vld [vmem:[%s4021_s2 + $0x30] sm:$0xff] }
 0x2c3   :  { %v1671_v17 = vrot.slane %v1664_v36, %v3363_v7  ;;  %v1618_v58 = vadd.f32 %v1598_v49, %v1564_v15  ;;  %v1555_v62 = vcombine.high %v1547_v3, %v1547_v3  ;;  %v1556_v11 = vcombine.high %v1554_v30, %v1554_v30 }
 0x2c4   :  { %v1648_v44 = vcombine.low %v1621_v6, %v1622_v51  ;;  %v1655_v50 = vrot.slane %v1647_v52, %v3363_v7  ;;  %v1613_v0 = vadd.f32 %v1599_v57, %v1547_v3  ;;  %v1615_v29 = vadd.f32 %v1600_v24, %v1554_v30 }
 0x2c5   :  { %v1626_v60 = vmax.f32 %v1612_v35, 0.0  ;;  %v1679_v41 = vcombine.low %v1671_v17, %v1678_v18  ;;  %v1614_v61 = vadd.f32 %v1598_v49, %v1555_v62  ;;  %v1616_v9 = vadd.f32 %v1591_v1, %v1556_v11  ;;  %v65_v35 = vld [vmem:[%s4021_s2 + $0x38] sm:$0x1f] }
 0x2c6   :  { %v1662_v56 = vrot.slane %v1648_v44, %v3363_v7  ;;  %v1631_v45 = vmax.f32 %v1617_v4, 0.0  ;;  %v1627_v54 = vmax.f32 %v1613_v0, 0.0  ;;  %v1629_v46 = vmax.f32 %v1615_v29, 0.0 }
 0x2c7   :  { %v1632_v47 = vmax.f32 %v1618_v58, 0.0  ;;  %v1628_v10 = vmax.f32 %v1614_v61, 0.0  ;;  %v1630_v37 = vmax.f32 %v1616_v9, 0.0  ;;  %v1719_v25 = vsel %vm1718_vm12, %v1679_v41, -inf }
 0x2c8   :  { %v1663_v2 = vcombine.low %v1655_v50, %v1662_v56  ;;  %v1680_v48 = vcombine.low %v1626_v60, %v1627_v54  ;;  %v1253_v36 = vsub.s32 4, %v3338_v43 }
 0x2c9   :  { %v1681_v55 = vcombine.low %v1628_v10, %v1629_v46  ;;  %v1697_v5 = vcombine.low %v1630_v37, %v1631_v45  ;;  %v1711_v22 = vrot.slane %v1632_v47, %v3363_v7 }
 0x2ca   :  { %v1717_v57 = vsel %vm1151_vm8, %v1663_v2, -inf  ;;  %v1688_v1 = vrot.slane %v1680_v48, %v3363_v7  ;;  %v1254_v6 = vrot.slane %v65_v35, %v1253_v36 }
 0x2cb   :  { %v1720_v59 = vmax.f32 %v1717_v57, %v1719_v25  ;;  %v1695_v49 = vrot.slane %v1681_v55, %v3363_v7  ;;  %v1704_v28 = vrot.slane %v1697_v5, %v3363_v7  ;;  %v63_v7 = vld [vmem:[%s4021_s2 + $0x28] sm:$0xff]  ;;  %s3216_s2 = scalar_lea.vmem %s2909_s5, 32 }
 0x2cc   :  { %v3196_v38 = vpack.c.bf16 %v64_v13, %v63_v7  ;;  %p3217_p0 = scmp.ne.s32.totalorder %s2909_s5, %s3216_s2  ;;  %p3222_p2 = scmp.lt.s32.totalorder %s3216_s2, %s3216_s2 }
 0x2cd   :  { %v1721_v8 = vrot.slane %v1720_v59, 4  ;;  %v1696_v14 = vcombine.low %v1688_v1, %v1695_v49  ;;  %v1712_v24 = vcombine.low %v1704_v28, %v1711_v22 }
 0x2ce   :  { %p3223_p3 = por %p3222_p2, %p3221_p1 }
 0x2cf   :  { %v1722_v12 = vmax.f32 %v1720_v59, %v1721_v8  ;;  %v1727_v42 = vsel %vm1151_vm8, %v1696_v14, -inf  ;;  %v1728_v21 = vsel %vm1718_vm12, %v1712_v24, -inf }
 0x2d0   :  { %v1729_v31 = vmax.f32 %v1727_v42, %v1728_v21  ;;  %p3224_p4 = pnand %p3223_p3, %p3217_p0 }
 0x2d1   :  { %v1723_v32 = vrot.slane %v1722_v12, 2 }
 0x2d2   :  { %v1730_v20 = vrot.slane %v1729_v31, 4 }
 0x2d3   :  { %v1724_v27 = vmax.f32 %v1722_v12, %v1723_v32 }
 0x2d4   :  { %v1731_v16 = vmax.f32 %v1729_v31, %v1730_v20 }
 0x2d5   :  { %v1725_v33 = vrot.slane %v1724_v27, 1 }
 0x2d6   :  { %v1732_v53 = vrot.slane %v1731_v16, 2 }
 0x2d7   :  { %v1726_v40 = vmax.f32 %v1724_v27, %v1725_v33 }
 0x2d8   :  { %v1733_v19 = vmax.f32 %v1731_v16, %v1732_v53 }
 0x2da   :  { %v1734_v23 = vrot.slane %v1733_v19, 1 }
 0x2dc   :  { %v1735_v34 = vmax.f32 %v1733_v19, %v1734_v23 }
 0x2de   :  { %v1738_v39 = vsel %vm1173_vm11, %v1735_v34, %v1726_v40 }
 0x2df   :  { %3068 = vmatmul.mubr.msk.f32.vlgmr.msra.gmra.mrb[0].mxu1 %vm1151_vm8, %v1738_v39 }
 0x2e0   :  { %3197 = vmatpush3.bf16.msra.mxu1 %v3196_v38  ;;  %3114 = vmatprep.mubr.msk.f32.mxu1 %vm3247_vm7, %v3246_v63 }
 0x2e1   :  { %3112 = vmatprep.subr.mxu1 %v3246_v63 }
 0x2e4   :  { %3113 = vmatpush3.msk.msra.mxu1 %vm1177_vm6, %v65_v35 }
 0x2e7   :  { %3115 = vmatmul.mubr.msk.f32.vlgmr.msra.gmra.mrb[0].mxu1 %vm1151_vm8, %v3925_v26 }
 0x3ba   :  { %v2889_v15 = vpop.f32.mrb[0].mxu1 }
 0x3bb   :  { %v3198_v51 = vadd.f32 %v2889_v15, %v1254_v6  ;;  %v3116_v52 = vpop.f32.mrb[1].mxu1 }
 0x3bd   :  { %v2939_v3 = vmul.f32 -1.442695, %v3198_v51 }
 0x3bf   :  { %3212 = vpow2.f32 %v2939_v3 }
 0x3c9   :  { %v3213_v30 = vpop.eup %3212 }
 0x3ca   :  { %v2897_v17 = vadd.f32 1.0, %v3213_v30 }
 0x3cc   :  { %3214 = vrcp.f32 %v2897_v17 }
 0x3d6   :  { %v3215_v63 = vpop.eup %3214 }
 0x3d7   :  { %2901 = vst.msk [vmem:[#allocation2] sm:$0x3] %vm2900_vm13, %v3215_v63 }
 0x3d8   :  { %3227 = shalt.err (!%p3224_p4)
}
 0x3d9   :  { %s3228_s8 = scalar_lea.hbm %s4022_s3, 32 }
 0x3da   :  { %p3229_p5 = scmp.ne.s32.totalorder %s4022_s3, %s3228_s8  ;;  %p3232_p6 = scmp.lt.u32.totalorder %s3228_s8, %s4022_s3 }
 0x3dc   :  { %p3234_p7 = pnand %p3232_p6, %p3229_p5 }
 0x3de   :  { %3237 = shalt.err (!%p3234_p7)
}
 0x3df   :  { %2911 = dma.vmem_to_hbm [thread:$0]  %s2909_s5, 32, %s4022_s3, [#allocation3]  }
 0x3e0   :  { %3238 = dma.done.wait [#allocation3], 32  }
 0x3e1   :  { %3239 = vsyncadd [#allocation3], 4294967264 }
 0x3e2   :  { %2915 = vsyncpa [#allocation3], 1 }

</bundles_post_ra>
